<compile_context>
chip_gen: v7x
topology: tpu7x:2x2x1
jax: 0.10.0
libtpu: 0.0.40
codegen_flags: <defaults>
</compile_context>

<pallas_src>
import functools

import jax
import jax.numpy as jnp
import numpy as np
from jax.experimental import pallas as pl
from jax.experimental.pallas import tpu as pltpu


def _round_up(x, m):
    return ((x + m - 1) // m) * m


_VMEM_TILE_BUDGET = 24 * 1024 * 1024      # working-set target per grid step
_VMEM_LIMIT_BYTES = 48 * 1024 * 1024      # < 64 MiB (v7x physical VMEM)


# ----------------------------------------------------------------------------
# Fused kernel: all layers + pooling + head for one tile of Bt graph pairs
# ----------------------------------------------------------------------------
def _fused_gnn_kernel(adj_ref, x_ref, *rest, n_real, block_diag, compute_dtype):
    """rest = (w_0, b_0, ..., w_{L-1}, b_{L-1}, pred_w, pred_b, out_ref).

    x_ref    : (1, G, Np, Fp)              G = 2*Bt (prod graphs then react)
    adj_ref  : (1, G*Np, G*Np) block-diag  OR  (1, G, Np, Np) batched
    w_l      : (Fin_l, Dout_l) compute_dtype,  b_l : (1, Dout_l) f32
    pred_w   : (2*Dp, Tp) compute_dtype,  pred_b : (1, Tp) f32
    out_ref  : (1, Bt, Tp) f32
    """
    out_ref = rest[-1]
    pred_b_ref = rest[-2]
    pred_w_ref = rest[-3]
    layer_refs = rest[:-3]
    n_layer = len(layer_refs) // 2

    _, G, Np, Fp = x_ref.shape
    bt = G // 2
    d_pad = pred_w_ref.shape[0] // 2

    if block_diag:
        a = adj_ref[0]                               # (G*Np, G*Np)
        h2 = x_ref[0].reshape(G * Np, Fp)            # free relayout (Np % 8 == 0)
        for l in range(n_layer):
            w = layer_refs[2 * l][...]               # (Fin, Dout) compute_dtype
            b = layer_refs[2 * l + 1][...]           # (1, Dout) f32
            fin, dout = w.shape
            hc = h2.astype(compute_dtype)
            if fin <= dout:
                msg = jnp.dot(a, hc, preferred_element_type=jnp.float32)
                z = jnp.dot(msg.astype(compute_dtype), w,
                            preferred_element_type=jnp.float32)
            else:
                hw = jnp.dot(hc, w, preferred_element_type=jnp.float32)
                z = jnp.dot(a, hw.astype(compute_dtype),
                            preferred_element_type=jnp.float32)
            h2 = jnp.maximum(z + b, 0.0)             # bias add / ReLU in f32
        h_nodes = h2.reshape(G, Np, d_pad)
    else:
        a = adj_ref[0]                               # (G, Np, Np)
        h = x_ref[0]                                 # (G, Np, Fp)
        for l in range(n_layer):
            w = layer_refs[2 * l][...]
            b = layer_refs[2 * l + 1][...]
            fin, dout = w.shape
            hc = h.astype(compute_dtype)
            if fin <= dout:
                msg = jnp.einsum("gij,gjf->gif", a, hc,
                                 preferred_element_type=jnp.float32)
                z = jnp.dot(msg.reshape(G * Np, fin).astype(compute_dtype), w,
                            preferred_element_type=jnp.float32)
                z = z.reshape(G, Np, dout)
            else:
                hw = jnp.dot(hc.reshape(G * Np, fin), w,
                             preferred_element_type=jnp.float32)
                z = jnp.einsum("gij,gjf->gif", a,
                               hw.reshape(G, Np, dout).astype(compute_dtype),
                               preferred_element_type=jnp.float32)
            h = jnp.maximum(z + b, 0.0)
        h_nodes = h                                  # (G, Np, Dp) f32

    # Mean pooling over the REAL nodes only (padded node rows masked out).
    if n_real != Np:
        node_mask = (jax.lax.broadcasted_iota(jnp.int32, (Np, 1), 0) < n_real
                     ).astype(h_nodes.dtype)
        h_nodes = h_nodes * node_mask[None]
    pooled = jnp.sum(h_nodes, axis=1) * (1.0 / n_real)   # (G, Dp), non-negative

    # Head: relu(cat(gp, gr)) @ W + b  ==  gp @ W[:Dp] + gr @ W[Dp:] + b
    # (outer ReLU dropped: pooled embeddings are already non-negative).
    gp = pooled[:bt].astype(compute_dtype)
    gr = pooled[bt:].astype(compute_dtype)
    wp = pred_w_ref[:d_pad, :]
    wr = pred_w_ref[d_pad:, :]
    out = (jnp.dot(gp, wp, preferred_element_type=jnp.float32)
           + jnp.dot(gr, wr, preferred_element_type=jnp.float32)
           + pred_b_ref[...])
    out_ref[0] = out.astype(out_ref.dtype)               # lane-dense store


# ----------------------------------------------------------------------------
# Batch-tile selection: largest divisor of B that fits the VMEM budget and
# (when possible) keeps >= 2 grid steps for megacore.
# ----------------------------------------------------------------------------
def _choose_batch_tile(B, n_pad, f_pad, d_pad, itemsize, block_diag,
                       const_bytes, budget):
    def estimate(bt):
        g = 2 * bt
        adj_b = (g * n_pad) ** 2 * itemsize if block_diag \
            else g * n_pad * n_pad * itemsize
        x_b = g * n_pad * f_pad * itemsize
        inter = 4 * g * n_pad * max(f_pad, d_pad) * 4   # ~4 live f32 tensors
        return 2 * (adj_b + x_b) + inter + 2 * const_bytes

    divisors = [d for d in range(B, 0, -1) if B % d == 0]
    for d in divisors:                     # prefer >= 2 grid steps
        if B // d >= 2 and estimate(d) <= budget:
            return d
    for d in divisors:                     # fall back (e.g. B == 1)
        if estimate(d) <= budget:
            return d
    return 1


# ----------------------------------------------------------------------------
# Wrapper: one pallas_call for the entire GNN_graphpred forward pass
# ----------------------------------------------------------------------------
def gnn_graphpred_forward(react, prod, params, *, batch_tile=None,
                          compute_dtype=jnp.bfloat16, use_block_diag=None,
                          vmem_limit_bytes=_VMEM_LIMIT_BYTES):
    """react/prod: dicts with 'x' [B,N,F] and 'adj' [B,N,N] (self loops added)."""
    x_p, adj_p = prod["x"], prod["adj"]
    x_r, adj_r = react["x"], react["adj"]
    B, N, F = x_p.shape
    dim = params["dim"]
    num_tasks = params["pred_w"].shape[-1]

    # Exact zero padding: N -> sublane multiple, F/dim/num_tasks -> lane mult.
    n_pad = _round_up(N, 8)
    f_pad = _round_up(F, 128)
    d_pad = _round_up(dim, 128)
    t_pad = _round_up(num_tasks, 128)
    itemsize = jnp.dtype(compute_dtype).itemsize

    # --- parameters (padded, MXU operands cast wrapper-side) ----------------
    ws_pad, bs_pad = [], []
    for l, (w, b) in enumerate(zip(params["ws"], params["bs"])):
        fin_pad = f_pad if l == 0 else d_pad
        wp = jnp.zeros((fin_pad, d_pad), jnp.float32)
        wp = wp.at[:w.shape[0], :w.shape[1]].set(w)
        bp = jnp.zeros((1, d_pad), jnp.float32)
        bp = bp.at[:, :b.shape[-1]].set(b.reshape(1, -1))
        ws_pad.append(wp.astype(compute_dtype))
        bs_pad.append(bp)                                   # bias stays f32
    pw = params["pred_w"]
    pred_w = jnp.zeros((2 * d_pad, t_pad), jnp.float32)
    pred_w = pred_w.at[:dim, :num_tasks].set(pw[:dim])
    pred_w = pred_w.at[d_pad:d_pad + dim, :num_tasks].set(pw[dim:])
    pred_w = pred_w.astype(compute_dtype)
    pred_b = jnp.zeros((1, t_pad), jnp.float32)
    pred_b = pred_b.at[:, :num_tasks].set(params["pred_b"].reshape(1, -1))

    const_bytes = sum(int(np.prod(w.shape)) for w in ws_pad) * itemsize \
        + 2 * d_pad * t_pad * itemsize

    # --- tile / mode selection ----------------------------------------------
    if use_block_diag is None:
        bt0 = _choose_batch_tile(B, n_pad, f_pad, d_pad, itemsize, False,
                                 const_bytes, _VMEM_TILE_BUDGET)
        block_diag = (2 * bt0 * n_pad) <= 512
    else:
        block_diag = bool(use_block_diag)
    if batch_tile is None:
        bt = _choose_batch_tile(B, n_pad, f_pad, d_pad, itemsize, block_diag,
                                const_bytes, _VMEM_TILE_BUDGET)
    else:
        bt = batch_tile
    assert B % bt == 0, "batch must be divisible by the batch tile"
    steps = B // bt
    g = 2 * bt

    # --- graph inputs: stack prod+react, pad, regroup per tile, cast ---------
    x = jnp.stack([x_p, x_r], axis=0)                        # (2, B, N, F)
    adj = jnp.stack([adj_p, adj_r], axis=0)                  # (2, B, N, N)
    x = jnp.pad(x, ((0, 0), (0, 0), (0, n_pad - N), (0, f_pad - F)))
    adj = jnp.pad(adj, ((0, 0), (0, 0), (0, n_pad - N), (0, n_pad - N)))
    x = x.astype(compute_dtype)
    adj = adj.astype(compute_dtype)                          # 0/1 exact in bf16

    x_g = (x.reshape(2, steps, bt, n_pad, f_pad)
             .transpose(1, 0, 2, 3, 4)
             .reshape(steps, g, n_pad, f_pad))               # prod groups first
    adj_g = (adj.reshape(2, steps, bt, n_pad, n_pad)
                .transpose(1, 0, 2, 3, 4)
                .reshape(steps, g, n_pad, n_pad))

    if block_diag:
        eye = jnp.eye(g, dtype=adj_g.dtype)
        bd = adj_g[:, :, None, :, :] * eye[None, :, :, None, None]
        adj_in = (bd.transpose(0, 1, 3, 2, 4)
                    .reshape(steps, g * n_pad, g * n_pad))
        adj_spec = pl.BlockSpec((1, g * n_pad, g * n_pad), lambda i: (i, 0, 0))
    else:
        adj_in = adj_g
        adj_spec = pl.BlockSpec((1, g, n_pad, n_pad), lambda i: (i, 0, 0, 0))

    # --- specs ----------------------------------------------------------------
    in_specs = [adj_spec,
                pl.BlockSpec((1, g, n_pad, f_pad), lambda i: (i, 0, 0, 0))]
    flat_params = []
    for w, b in zip(ws_pad, bs_pad):
        flat_params += [w, b]
        in_specs += [pl.BlockSpec(tuple(w.shape), lambda i: (0, 0)),
                     pl.BlockSpec(tuple(b.shape), lambda i: (0, 0))]
    flat_params += [pred_w, pred_b]
    in_specs += [pl.BlockSpec(tuple(pred_w.shape), lambda i: (0, 0)),
                 pl.BlockSpec(tuple(pred_b.shape), lambda i: (0, 0))]

    kernel = functools.partial(_fused_gnn_kernel, n_real=N,
                               block_diag=block_diag,
                               compute_dtype=compute_dtype)

    out = pl.pallas_call(
        kernel,
        out_shape=jax.ShapeDtypeStruct((steps, bt, t_pad), jnp.float32),
        grid_spec=pltpu.PrefetchScalarGridSpec(
            num_scalar_prefetch=0,
            grid=(steps,),
            in_specs=in_specs,
            out_specs=pl.BlockSpec((1, bt, t_pad), lambda i: (i, 0, 0)),
        ),
        compiler_params=pltpu.CompilerParams(
            dimension_semantics=("parallel",),
            vmem_limit_bytes=int(vmem_limit_bytes)),
    )(adj_in, x_g, *flat_params)
    return out.reshape(B, t_pad)[:, :num_tasks]


# ----------------------------------------------------------------------------
# Pure-JAX reference (same math) for a correctness check
# ----------------------------------------------------------------------------
def reference_forward(react, prod, params):
    hi = jax.lax.Precision.HIGHEST

    def gnn(adj, x):
        h = x
        for w, b in zip(params["ws"], params["bs"]):
            msg = jnp.einsum("bij,bjf->bif", adj, h, precision=hi)
            z = jnp.einsum("bnf,fd->bnd", msg, w, precision=hi) + b
            h = jnp.maximum(z, 0.0)
        return jnp.mean(h, axis=1)

    gr = gnn(react["adj"], react["x"])
    gp = gnn(prod["adj"], prod["x"])
    g = jnp.maximum(jnp.concatenate([gp, gr], axis=1), 0.0)  # cat(prod, react)
    return jnp.dot(g, params["pred_w"], precision=hi) + params["pred_b"]


# ----------------------------------------------------------------------------
# Deterministic parameter / input construction
# ----------------------------------------------------------------------------
def init_params(key, n_layer, node_feature_len, dim, num_tasks):
    ws, bs = [], []
    fin = node_feature_len
    for _ in range(n_layer):
        key, kw = jax.random.split(key)
        ws.append(jax.random.normal(kw, (fin, dim), jnp.float32)
                  * (1.0 / jnp.sqrt(fin)))
        bs.append(jnp.zeros((1, dim), jnp.float32))
        fin = dim
    key, kw = jax.random.split(key)
    pred_w = jax.random.normal(kw, (2 * dim, num_tasks), jnp.float32) \
        * (1.0 / jnp.sqrt(2 * dim))
    pred_b = jnp.zeros((1, num_tasks), jnp.float32)
    return {"ws": ws, "bs": bs, "pred_w": pred_w, "pred_b": pred_b, "dim": dim}


def make_graph(key, batch, n_nodes, node_feature_len):
    kx, ka = jax.random.split(key)
    x = jax.random.normal(kx, (batch, n_nodes, node_feature_len), jnp.float32)
    a = (jax.random.uniform(ka, (batch, n_nodes, n_nodes)) > 0.5
         ).astype(jnp.float32)
    a = jnp.maximum(a, jnp.transpose(a, (0, 2, 1)))               # symmetric
    a = a + jnp.eye(n_nodes, dtype=jnp.float32)[None, :, :]       # self loops
    return {"x": x, "adj": a}


if __name__ == "__main__":
    batch = 2
    n_nodes = 8
    n_layer = 2
    node_feature_len = 16
    bond_feature_len = 8   # TODO(synk): unused — reference GNN submodule not given
    dim = 32
    num_tasks = 4

    key = jax.random.PRNGKey(0)
    kp, kr, kq, kp2, kr2, kq2 = jax.random.split(key, 6)

    params = init_params(kp, n_layer, node_feature_len, dim, num_tasks)
    react = make_graph(kr, batch, n_nodes, node_feature_len)
    prod = make_graph(kq, batch, n_nodes, node_feature_len)
    ref = reference_forward(react, prod, params)

    # 1) default path: bf16 MXU inputs + f32 accumulation, block-diag A@H
    out = jax.block_until_ready(gnn_graphpred_forward(react, prod, params))
    assert out.shape == (batch, num_tasks), out.shape
    np.testing.assert_allclose(np.asarray(out), np.asarray(ref),
                               rtol=5e-2, atol=5e-2)

    # 2) f32 compute, block-diagonal message passing
    out = jax.block_until_ready(gnn_graphpred_forward(
        react, prod, params, compute_dtype=jnp.float32, use_block_diag=True))
    np.testing.assert_allclose(np.asarray(out), np.asarray(ref),
                               rtol=5e-3, atol=5e-3)

    # 3) f32 compute, batched-einsum message passing (large-graph fallback)
    out = jax.block_until_ready(gnn_graphpred_forward(
        react, prod, params, compute_dtype=jnp.float32, use_block_diag=False))
    np.testing.assert_allclose(np.asarray(out), np.asarray(ref),
                               rtol=5e-3, atol=5e-3)

    # 4) shape set exercising the A@(H@W) ordering (Fin_pad > Dout_pad)
    params2 = init_params(kp2, 1, 130, dim, 3)
    react2 = make_graph(kr2, batch, n_nodes, 130)
    prod2 = make_graph(kq2, batch, n_nodes, 130)
    ref2 = reference_forward(react2, prod2, params2)
    for bd in (True, False):
        out2 = jax.block_until_ready(gnn_graphpred_forward(
            react2, prod2, params2, compute_dtype=jnp.float32,
            use_block_diag=bd))
        np.testing.assert_allclose(np.asarray(out2), np.asarray(ref2),
                                   rtol=5e-3, atol=5e-3)

    print("KERNEL_OK")
</pallas_src>

<mosaic_0001>
module attributes {stable_mosaic.version = 11 : i64} {
  func.func @_fused_gnn_kernel(%arg0: i32, %arg1: memref<1x16x16xbf16, #tpu.memory_space<vmem>>, %arg2: memref<1x2x8x128xbf16, #tpu.memory_space<vmem>>, %arg3: memref<128x128xbf16, #tpu.memory_space<vmem>>, %arg4: memref<1x128xf32, #tpu.memory_space<vmem>>, %arg5: memref<128x128xbf16, #tpu.memory_space<vmem>>, %arg6: memref<1x128xf32, #tpu.memory_space<vmem>>, %arg7: memref<256x128xbf16, #tpu.memory_space<vmem>>, %arg8: memref<1x128xf32, #tpu.memory_space<vmem>>, %arg9: memref<1x1x128xf32, #tpu.memory_space<vmem>>) attributes {dimension_semantics = [#tpu.dimension_semantics<parallel>], iteration_bounds = array<i64: 2>, scalar_prefetch = 0 : i64, scratch_operands = 0 : i64, tpu.core_type = #tpu.core_type<tc>, window_params = [{transform_indices = @transform_0, window_bounds = array<i64: 1, 16, 16>}, {transform_indices = @transform_1, window_bounds = array<i64: 1, 2, 8, 128>}, {pipeline_mode = #tpu.pipeline_mode<synchronous>, transform_indices = @transform_2, window_bounds = array<i64: 128, 128>}, {pipeline_mode = #tpu.pipeline_mode<synchronous>, transform_indices = @transform_3, window_bounds = array<i64: 1, 128>}, {pipeline_mode = #tpu.pipeline_mode<synchronous>, transform_indices = @transform_4, window_bounds = array<i64: 128, 128>}, {pipeline_mode = #tpu.pipeline_mode<synchronous>, transform_indices = @transform_5, window_bounds = array<i64: 1, 128>}, {pipeline_mode = #tpu.pipeline_mode<synchronous>, transform_indices = @transform_6, window_bounds = array<i64: 256, 128>}, {pipeline_mode = #tpu.pipeline_mode<synchronous>, transform_indices = @transform_7, window_bounds = array<i64: 1, 128>}, {transform_indices = @transform_8, window_bounds = array<i64: 1, 1, 128>}]} {
    %c0 = arith.constant 0 : index
    %c0_0 = arith.constant 0 : index
    %c0_1 = arith.constant 0 : index
    %0 = vector.load %arg1[%c0, %c0_0, %c0_1] : memref<1x16x16xbf16, #tpu.memory_space<vmem>>, vector<1x16x16xbf16>
    %1 = vector.shape_cast %0 : vector<1x16x16xbf16> to vector<16x16xbf16>
    %c0_2 = arith.constant 0 : index
    %c0_3 = arith.constant 0 : index
    %c0_4 = arith.constant 0 : index
    %c0_5 = arith.constant 0 : index
    %2 = vector.load %arg2[%c0_2, %c0_3, %c0_4, %c0_5] : memref<1x2x8x128xbf16, #tpu.memory_space<vmem>>, vector<1x2x8x128xbf16>
    %3 = vector.shape_cast %2 : vector<1x2x8x128xbf16> to vector<2x8x128xbf16>
    %4 = vector.shape_cast %3 : vector<2x8x128xbf16> to vector<16x128xbf16>
    %c0_6 = arith.constant 0 : index
    %c0_7 = arith.constant 0 : index
    %5 = vector.load %arg3[%c0_6, %c0_7] : memref<128x128xbf16, #tpu.memory_space<vmem>>, vector<128x128xbf16>
    %c0_8 = arith.constant 0 : index
    %c0_9 = arith.constant 0 : index
    %6 = vector.load %arg4[%c0_8, %c0_9] : memref<1x128xf32, #tpu.memory_space<vmem>>, vector<1x128xf32>
    %cst = arith.constant dense<0.000000e+00> : vector<16x128xf32>
    %7 = tpu.matmul %1, %4, %cst {dimension_numbers = #tpu.dot_dimension_numbers<[1], [0], [0], [1], [0, 0, 1, 1], [], []>} : vector<16x16xbf16>, vector<16x128xbf16>, vector<16x128xf32> -> vector<16x128xf32>
    %8 = arith.truncf %7 : vector<16x128xf32> to vector<16x128xbf16>
    %cst_10 = arith.constant dense<0.000000e+00> : vector<16x128xf32>
    %9 = tpu.matmul %8, %5, %cst_10 {dimension_numbers = #tpu.dot_dimension_numbers<[1], [0], [0], [1], [0, 0, 1, 1], [], []>} : vector<16x128xbf16>, vector<128x128xbf16>, vector<16x128xf32> -> vector<16x128xf32>
    %10 = vector.broadcast %6 : vector<1x128xf32> to vector<16x128xf32>
    %11 = arith.addf %9, %10 : vector<16x128xf32>
    %cst_11 = arith.constant 0.000000e+00 : f32
    %12 = vector.broadcast %cst_11 : f32 to vector<16x128xf32>
    %13 = arith.maximumf %11, %12 : vector<16x128xf32>
    %c0_12 = arith.constant 0 : index
    %c0_13 = arith.constant 0 : index
    %14 = vector.load %arg5[%c0_12, %c0_13] : memref<128x128xbf16, #tpu.memory_space<vmem>>, vector<128x128xbf16>
    %c0_14 = arith.constant 0 : index
    %c0_15 = arith.constant 0 : index
    %15 = vector.load %arg6[%c0_14, %c0_15] : memref<1x128xf32, #tpu.memory_space<vmem>>, vector<1x128xf32>
    %16 = arith.truncf %13 : vector<16x128xf32> to vector<16x128xbf16>
    %cst_16 = arith.constant dense<0.000000e+00> : vector<16x128xf32>
    %17 = tpu.matmul %1, %16, %cst_16 {dimension_numbers = #tpu.dot_dimension_numbers<[1], [0], [0], [1], [0, 0, 1, 1], [], []>} : vector<16x16xbf16>, vector<16x128xbf16>, vector<16x128xf32> -> vector<16x128xf32>
    %18 = arith.truncf %17 : vector<16x128xf32> to vector<16x128xbf16>
    %cst_17 = arith.constant dense<0.000000e+00> : vector<16x128xf32>
    %19 = tpu.matmul %18, %14, %cst_17 {dimension_numbers = #tpu.dot_dimension_numbers<[1], [0], [0], [1], [0, 0, 1, 1], [], []>} : vector<16x128xbf16>, vector<128x128xbf16>, vector<16x128xf32> -> vector<16x128xf32>
    %20 = vector.broadcast %15 : vector<1x128xf32> to vector<16x128xf32>
    %21 = arith.addf %19, %20 : vector<16x128xf32>
    %cst_18 = arith.constant 0.000000e+00 : f32
    %22 = vector.broadcast %cst_18 : f32 to vector<16x128xf32>
    %23 = arith.maximumf %21, %22 : vector<16x128xf32>
    %24 = vector.shape_cast %23 : vector<16x128xf32> to vector<2x8x128xf32>
    %cst_19 = arith.constant dense<0.000000e+00> : vector<2x128xf32>
    %25 = vector.multi_reduction <add>, %24, %cst_19 [1] : vector<2x8x128xf32> to vector<2x128xf32>
    %cst_20 = arith.constant 1.250000e-01 : f32
    %26 = vector.broadcast %cst_20 : f32 to vector<2x128xf32>
    %27 = arith.mulf %25, %26 : vector<2x128xf32>
    %28 = vector.extract_strided_slice %27 {offsets = [0, 0], sizes = [1, 128], strides = [1, 1]} : vector<2x128xf32> to vector<1x128xf32>
    %29 = arith.truncf %28 : vector<1x128xf32> to vector<1x128xbf16>
    %30 = vector.extract_strided_slice %27 {offsets = [1, 0], sizes = [1, 128], strides = [1, 1]} : vector<2x128xf32> to vector<1x128xf32>
    %31 = arith.truncf %30 : vector<1x128xf32> to vector<1x128xbf16>
    %c0_21 = arith.constant 0 : index
    %c0_22 = arith.constant 0 : index
    %32 = vector.load %arg7[%c0_21, %c0_22] : memref<256x128xbf16, #tpu.memory_space<vmem>>, vector<128x128xbf16>
    %c128 = arith.constant 128 : index
    %c0_23 = arith.constant 0 : index
    %33 = vector.load %arg7[%c128, %c0_23] : memref<256x128xbf16, #tpu.memory_space<vmem>>, vector<128x128xbf16>
    %cst_24 = arith.constant dense<0.000000e+00> : vector<1x128xf32>
    %34 = tpu.matmul %29, %32, %cst_24 {dimension_numbers = #tpu.dot_dimension_numbers<[1], [0], [0], [1], [0, 0, 1, 1], [], []>} : vector<1x128xbf16>, vector<128x128xbf16>, vector<1x128xf32> -> vector<1x128xf32>
    %cst_25 = arith.constant dense<0.000000e+00> : vector<1x128xf32>
    %35 = tpu.matmul %31, %33, %cst_25 {dimension_numbers = #tpu.dot_dimension_numbers<[1], [0], [0], [1], [0, 0, 1, 1], [], []>} : vector<1x128xbf16>, vector<128x128xbf16>, vector<1x128xf32> -> vector<1x128xf32>
    %36 = arith.addf %34, %35 : vector<1x128xf32>
    %c0_26 = arith.constant 0 : index
    %c0_27 = arith.constant 0 : index
    %37 = vector.load %arg8[%c0_26, %c0_27] : memref<1x128xf32, #tpu.memory_space<vmem>>, vector<1x128xf32>
    %38 = arith.addf %36, %37 : vector<1x128xf32>
    %c0_28 = arith.constant 0 : index
    %c0_29 = arith.constant 0 : index
    %c0_30 = arith.constant 0 : index
    %39 = vector.load %arg9[%c0_28, %c0_29, %c0_30] : memref<1x1x128xf32, #tpu.memory_space<vmem>>, vector<1x1x128xf32>
    %40 = vector.shape_cast %39 : vector<1x1x128xf32> to vector<1x128xf32>
    %41 = vector.shape_cast %38 : vector<1x128xf32> to vector<1x1x128xf32>
    tpu.vector_store %arg9[%c0_28, %c0_29, %c0_30], %41 {strides = array<i32>} : memref<1x1x128xf32, #tpu.memory_space<vmem>>, vector<1x1x128xf32>,
    return
  }
  func.func @transform_0(%arg0: i32) -> (i32, i32, i32) {
    %c0_i32 = arith.constant 0 : i32
    %c0_i32_0 = arith.constant 0 : i32
    %c0_i32_1 = arith.constant 0 : i32
    return %arg0, %c0_i32, %c0_i32_0 : i32, i32, i32
  }
  func.func @transform_1(%arg0: i32) -> (i32, i32, i32, i32) {
    %c0_i32 = arith.constant 0 : i32
    %c0_i32_0 = arith.constant 0 : i32
    %c0_i32_1 = arith.constant 0 : i32
    %c0_i32_2 = arith.constant 0 : i32
    return %arg0, %c0_i32, %c0_i32_0, %c0_i32_1 : i32, i32, i32, i32
  }
  func.func @transform_2(%arg0: i32) -> (i32, i32) {
    %c0_i32 = arith.constant 0 : i32
    %c0_i32_0 = arith.constant 0 : i32
    %c0_i32_1 = arith.constant 0 : i32
    return %c0_i32, %c0_i32_0 : i32, i32
  }
  func.func @transform_3(%arg0: i32) -> (i32, i32) {
    %c0_i32 = arith.constant 0 : i32
    %c0_i32_0 = arith.constant 0 : i32
    %c0_i32_1 = arith.constant 0 : i32
    return %c0_i32, %c0_i32_0 : i32, i32
  }
  func.func @transform_4(%arg0: i32) -> (i32, i32) {
    %c0_i32 = arith.constant 0 : i32
    %c0_i32_0 = arith.constant 0 : i32
    %c0_i32_1 = arith.constant 0 : i32
    return %c0_i32, %c0_i32_0 : i32, i32
  }
  func.func @transform_5(%arg0: i32) -> (i32, i32) {
    %c0_i32 = arith.constant 0 : i32
    %c0_i32_0 = arith.constant 0 : i32
    %c0_i32_1 = arith.constant 0 : i32
    return %c0_i32, %c0_i32_0 : i32, i32
  }
  func.func @transform_6(%arg0: i32) -> (i32, i32) {
    %c0_i32 = arith.constant 0 : i32
    %c0_i32_0 = arith.constant 0 : i32
    %c0_i32_1 = arith.constant 0 : i32
    return %c0_i32, %c0_i32_0 : i32, i32
  }
  func.func @transform_7(%arg0: i32) -> (i32, i32) {
    %c0_i32 = arith.constant 0 : i32
    %c0_i32_0 = arith.constant 0 : i32
    %c0_i32_1 = arith.constant 0 : i32
    return %c0_i32, %c0_i32_0 : i32, i32
  }
  func.func @transform_8(%arg0: i32) -> (i32, i32, i32) {
    %c0_i32 = arith.constant 0 : i32
    %c0_i32_0 = arith.constant 0 : i32
    %c0_i32_1 = arith.constant 0 : i32
    return %arg0, %c0_i32, %c0_i32_0 : i32, i32, i32
  }
}

</mosaic_0001>

<bundles_post_ra>
// kernel: tpu_custom_call.1
= control target key start
LH: loop header
LB: loop body
LE: loop exit
PB: predicated region body
PF: predicated region fallthrough
CT: control target
= control target key end

     0   :  { %s2061_s0 = inlined_call_operand.hbm [shape: bf16[2,16,16], index: 0, kind: input, shape index: {}]   ;;  %s2062_s1 = inlined_call_operand.hbm [shape: bf16[2,2,8,128], index: 1, kind: input, shape index: {}]   ;;  %s2063_s2 = inlined_call_operand.hbm [shape: bf16[128,128], index: 2, kind: input, shape index: {}]   ;;  %s2064_s3 = inlined_call_operand.vmem [shape: f32[1,128], index: 3, kind: input, shape index: {}]   ;;  %s2065_s4 = inlined_call_operand.hbm [shape: bf16[128,128], index: 4, kind: input, shape index: {}]   ;;  %s2066_s5 = inlined_call_operand.vmem [shape: f32[1,128], index: 5, kind: input, shape index: {}]   ;;  %s2067_s6 = inlined_call_operand.hbm [shape: bf16[256,128], index: 6, kind: input, shape index: {}]   ;;  %s2068_s7 = inlined_call_operand.vmem [shape: f32[1,128], index: 7, kind: input, shape index: {}]   ;;  %s2069_s8 = inlined_call_operand.hbm [shape: f32[2,1,128], index: 8, kind: output, shape index: {}]  }
   0x1   :  { %2079 = sst [smem:[#allocation20_spill]] %s2061_s0 }
   0x2   :  { %2080 = sst [smem:[#allocation21_spill]] %s2063_s2 }
   0x3   :  { %2081 = sst [smem:[#allocation22_spill]] %s2065_s4 }
   0x4   :  { %2082 = sst [smem:[#allocation23_spill]] %s2067_s6 }
   0x5   :  { %13 = vsyncpa [#allocation3], 0 }
   0x6   :  { %15 = vsyncpa [#allocation3 + $0x1], 0 }
   0x7   :  { %16 = vsyncpa [#allocation6], 0 }
   0x8   :  { %18 = vsyncpa [#allocation6 + $0x1], 0 }
   0x9   :  { %19 = vsyncpa [#allocation9], 0 }
   0xa   :  { %20 = vsyncpa [#allocation4], 0 }
   0xb   :  { %22 = vsyncpa [#allocation4 + $0x1], 0  ;;  %s1688_s27 = smov 0   ;;  %s1690_s28 = smov 0  }
   0xc   :  { %s1692_s29 = smov 0   ;;  %s1694_s30 = smov 0  }
   0xd LB: > { %2083 = sst [smem:[#allocation17_spill]] %s1619_s27  ;;  %s1709_s9 = sadd.s32 4294967295, %s1631_s30   ;;  %s1631_s30 = sphi %s1694_s30, %s2114_s30   ;;  %s1627_s29 = sphi %s1692_s29, %s2113_s29   ;;  %s1623_s28 = sphi %s1690_s28, %s2112_s28   ;;  %s1619_s27 = sphi %s1688_s27, %s2111_s27  }
   0xe   : > { %s1096_s10 = sadd.s32 4294967294, %s1631_s30   ;;  %p48_p0 = scmp.ne.s32.totalorder %s1623_s28, %s1619_s27 }
   0xf   : > { %p2070_p1 = scmp.eq.s32.totalorder %s1709_s9, 0  ;;  %p230_p3 = scmp.eq.s32.totalorder %s1096_s10, 1 }
  0x10   : > { %p1097_p5 = scmp.ge.s32.totalorder %s1631_s30, 1  ;;  %p237_p7 = scmp.lt.s32.totalorder %s1631_s30, 3 }
  0x11   : > { %p1718_p4 = por %p2070_p1, %p48_p0  ;;  %p1723_p6 = por %p230_p3, %p48_p0 }
  0x12   : > { %p1728_p8 = pnand %p1097_p5, %p237_p7  ;;  %s1633_s14 = smov [#allocation7]  }
  0x13   : > { %s2084_s11 = scalar_select %p1718_p4, 1, 0 }
  0x14   : > { %s2085_s12 = scalar_select %p1723_p6, 1, 0 }
  0x15   : > { %s2087_s13 = scalar_select %p1728_p8, 1, 0 }
  0x16   : > { %2086 = sst [smem:[#allocation18_spill]] %s2085_s12  ;;  %s249_s15 = sshll.u32 %s1633_s14, 4  ;;  %s1732_s15 = int_to_ptr.vmem [resolvable:$true] %s249_s15 }
  0x17   : > { %p1307_p9 = pneg %p1728_p8  ;;  %s1634_s17 = smov [#allocation8]  }
  0x18   : > { %s265_s18 = sshll.u32 %s1634_s17, 4  ;;  %s1635_s19 = smov [#allocation10]   ;;  %s1743_s18 = int_to_ptr.vmem [resolvable:$true] %s265_s18 }
  0x19   : > { %p1739_p11 = pnand %p1307_p9, %p2070_p1  ;;  %s1745_s20 = sshll.u32 %s1635_s19, 4  ;;  %s282_s20 = int_to_ptr.vmem [resolvable:$true] %s1745_s20 }
  0x1a   : > { %s2089_s2 = sld [smem:[#allocation21_spill]] }
  0x1b   : > { %p1755_p13 = pneg %p1739_p11 }
  0x20   : > { %s1409_s23 = scalar_lea.hbm %s2089_s2, 1024 }
  0x21   : > { %p1410_p12 = scmp.ne.s32.totalorder %s2089_s2, %s1409_s23  ;;  %p1416_p5 = scmp.lt.u32.totalorder %s1409_s23, %s2089_s2 }
  0x23   : > { %p1412_p0 = pnand %p1755_p13, %p1410_p12 }
  0x25   : > { %p1413_p3 = pneg %p1412_p0 }
  0x27   : > { %p1418_p7 = pnand %p1416_p5, %p1413_p3 }
  0x29   : > { %1421 = shalt.err (!%p1418_p7)
}
  0x2a   : > { %s1422_s17 = scalar_lea.vmem %s1732_s15, 1024  ;;  %p1430_p2 = scmp.lt.s32.totalorder %s1732_s15, %s1732_s15 }
  0x2b   : > { %p1423_p9 = scmp.ne.s32.totalorder %s1732_s15, %s1422_s17  ;;  %p1431_p6 = scmp.lt.s32.totalorder %s1422_s17, %s1422_s17 }
  0x2d   : > { %p1425_p10 = pnand %p1423_p9, %p1755_p13  ;;  %p1432_p12 = por %p1431_p6, %p1430_p2 }
  0x2f   : > { %p1426_p1 = pneg %p1425_p10 }
  0x31   : > { %p1433_p0 = pnand %p1432_p12, %p1426_p1 }
  0x33   : > { %1436 = shalt.err (!%p1433_p0)
}
  0x34   : > { %s2075_s19 = smov 64   ;;  %s2077_s21 = smov 4  }
  0x35   : > { %1310 = dma.hbm_to_vmem [thread:$0]  (!%p1739_p11), %s2089_s2, 1024, %s1732_s15, [#allocation6], %s2075_s19, %s2075_s19, %s2077_s21  }
  0x36   : > { %s2091_s4 = sld [smem:[#allocation22_spill]] }
  0x3c   : > { %s1437_s10 = scalar_lea.hbm %s2091_s4, 1024 }
  0x3d   : > { %p1438_p1 = scmp.ne.s32.totalorder %s2091_s4, %s1437_s10  ;;  %p1444_p10 = scmp.lt.u32.totalorder %s1437_s10, %s2091_s4 }
  0x3f   : > { %p1440_p2 = pnand %p1438_p1, %p1755_p13 }
  0x41   : > { %p1441_p6 = pneg %p1440_p2 }
  0x43   : > { %p1446_p3 = pnand %p1444_p10, %p1441_p6 }
  0x45   : > { %1449 = shalt.err (!%p1446_p3)
}
  0x46   : > { %s1450_s15 = scalar_lea.vmem %s1743_s18, 1024  ;;  %p1458_p12 = scmp.lt.s32.totalorder %s1743_s18, %s1743_s18 }
  0x47   : > { %p1451_p5 = scmp.ne.s32.totalorder %s1743_s18, %s1450_s15  ;;  %p1459_p0 = scmp.lt.s32.totalorder %s1450_s15, %s1450_s15 }
  0x49   : > { %p1453_p7 = pnand %p1451_p5, %p1755_p13  ;;  %p1460_p1 = por %p1459_p0, %p1458_p12 }
  0x4b   : > { %p1454_p9 = pneg %p1453_p7 }
  0x4d   : > { %p1461_p2 = pnand %p1460_p1, %p1454_p9 }
  0x4f   : > { %1464 = shalt.err (!%p1461_p2)
}
  0x50   : > { %1313 = dma.hbm_to_vmem [thread:$0]  (!%p1739_p11), %s2091_s4, 1024, %s1743_s18, [#allocation9], %s2075_s19, %s2075_s19, %s2077_s21  }
  0x51   : > { %s2092_s6 = sld [smem:[#allocation23_spill]] }
  0x57   : > { %s1465_s24 = scalar_lea.hbm %s2092_s6, 2048 }
  0x58   : > { %p1466_p6 = scmp.ne.s32.totalorder %s2092_s6, %s1465_s24  ;;  %p1472_p5 = scmp.lt.u32.totalorder %s1465_s24, %s2092_s6 }
  0x5a   : > { %p1468_p10 = pnand %p1466_p6, %p1755_p13 }
  0x5c   : > { %p1469_p3 = pneg %p1468_p10 }
  0x5e   : > { %p1474_p7 = pnand %p1472_p5, %p1469_p3 }
  0x60   : > { %1477 = shalt.err (!%p1474_p7)
}
  0x61   : > { %s1478_s15 = scalar_lea.vmem %s282_s20, 2048  ;;  %p1486_p1 = scmp.lt.s32.totalorder %s282_s20, %s282_s20 }
  0x62   : > { %p1479_p9 = scmp.ne.s32.totalorder %s282_s20, %s1478_s15  ;;  %p1487_p2 = scmp.lt.s32.totalorder %s1478_s15, %s1478_s15 }
  0x64   : > { %p1481_p12 = pnand %p1479_p9, %p1755_p13  ;;  %p1488_p4 = por %p1487_p2, %p1486_p1 }
  0x66   : > { %p1482_p0 = pneg %p1481_p12 }
  0x68   : > { %p1489_p8 = pnand %p1488_p4, %p1482_p0 }
  0x6a   : > { %1492 = shalt.err (!%p1489_p8)
}
  0x6b   : > { %1316 = dma.hbm_to_vmem [thread:$0]  (!%p1739_p11), %s2092_s6, 2048, %s282_s20, [#allocation9], %s2075_s19, %s2075_s19, %s2077_s21  }
  0x6c   : > { %s1828_s26 = sadd.s32 1, %s1631_s30   ;;  %s35_s12 = sadd.s32 1, %s1627_s29 }
  0x6d   : > { %s32_s16 = ssub.s32 %s1631_s30, %s1828_s26  ;;  %p42_p8 = scmp.ne.s32.totalorder %s1627_s29, %s1623_s28 }
  0x6e   : > { %p33_p4 = scmp.eq.s32.totalorder %s32_s16, 0  ;;  %p43_p13 = scmp.eq.s32.totalorder %s1631_s30, 0 }
  0x6f   : > { %p1331_p6 = scmp.lt.s32.totalorder %s1631_s30, 2  ;;  %p2094_p3 = scmp.eq.s32.totalorder %s1709_s9, 1 }
  0x70   : > { %s1838_s22 = scalar_select %p33_p4, %s1627_s29, %s35_s12  }
  0x71   : > { %p44_p10 = por %p43_p13, %p42_p8  ;;  %p1842_p5 = por %p2094_p3, %p42_p8 }
  0x72   : > { %2093 = sst [smem:[#allocation19_spill]] %s1838_s22  ;;  %s298_s24 = sand.u32 1, %s1627_s29  }
  0x73   : > { %s1155_s25 = sshll.u32 %s1631_s30, 7  ;;  %s1848_s20 = sshll.u32 %s298_s24, 3 }
  0x74   : > { %s2096_s0 = sld [smem:[#allocation20_spill]]  ;;  %s302_s15 = scalar_lea.vmem [#allocation2], %s1848_s20 }
  0x75   : > { %s309_s18 = sshll.u32 %s302_s15, 4  ;;  %p1856_p11 = pnand %p1331_p6, %p44_p10  ;;  %s1860_s18 = int_to_ptr.vmem [resolvable:$true] %s309_s18 }
  0x76   : > { %s1865_s10 = scalar_lea.hbm %s2062_s1, %s1155_s25  ;;  %s1867_s14 = scalar_lea.sflag [#allocation3], %s298_s24 }
  0x77   : > { %p1495_p9 = pneg %p1856_p11 }
  0x7a   : > { %s1853_s17 = scalar_lea.hbm %s2096_s0, %s1155_s25  ;;  %s1498_s2 = scalar_lea.hbm %s2096_s0, 256 }
  0x7b   : > { %s1493_s19 = scalar_lea.hbm %s1853_s17, 128  ;;  %p1499_p1 = scmp.lt.u32.totalorder %s1853_s17, %s2096_s0 }
  0x7c   : > { %p1494_p7 = scmp.ne.s32.totalorder %s1853_s17, %s1493_s19  ;;  %p1500_p2 = scmp.lt.u32.totalorder %s1498_s2, %s1493_s19 }
  0x7d   : > { %p1502_p8 = scmp.lt.u32.totalorder %s1493_s19, %s1853_s17 }
  0x7e   : > { %p1496_p12 = pnand %p1495_p9, %p1494_p7  ;;  %p1501_p4 = por %p1500_p2, %p1499_p1 }
  0x80   : > { %p1497_p0 = pneg %p1496_p12  ;;  %p1503_p13 = por %p1502_p8, %p1501_p4 }
  0x82   : > { %p1504_p6 = pnand %p1503_p13, %p1497_p0 }
  0x84   : > { %1507 = shalt.err (!%p1504_p6)
}
  0x85   : > { %s1508_s24 = scalar_lea.vmem %s1860_s18, 128  ;;  %s1638_s21 = smov [#allocation2]  }
  0x86   : > { %p1509_p10 = scmp.ne.s32.totalorder %s1860_s18, %s1508_s24  ;;  %s1513_s25 = sshll.u32 %s1638_s21, 4  ;;  %s1514_s25 = int_to_ptr.vmem [resolvable:$false] %s1513_s25 }
  0x87   : > { %s1515_s4 = scalar_lea.vmem %s1514_s25, 256  ;;  %p1516_p12 = scmp.lt.s32.totalorder %s1860_s18, %s1514_s25 }
  0x88   : > { %p1511_p3 = pnand %p1509_p10, %p1495_p9  ;;  %p1517_p1 = scmp.lt.s32.totalorder %s1515_s4, %s1508_s24 }
  0x8a   : > { %p1512_p7 = pneg %p1511_p3  ;;  %p1518_p2 = por %p1517_p1, %p1516_p12 }
  0x8c   : > { %p1519_p4 = pnand %p1518_p2, %p1512_p7 }
  0x8e   : > { %1522 = shalt.err (!%p1519_p4)
}
  0x8f   : > { %s2098_s2 = smov 4   ;;  %s2099_s6 = smov 64  }
  0x90   : > { %1320 = dma.hbm_to_vmem [thread:$0]  (!%p1856_p11), %s1853_s17, 128, %s1860_s18, %s1867_s14, %s2099_s6, %s2099_s6, %s2098_s2  }
  0x91   : > { %s323_s19 = scalar_lea.vmem [#allocation5], %s1848_s20  ;;  %s319_s12 = sand.u32 1, %s1631_s30  }
  0x92   : > { %s330_s16 = sshll.u32 %s323_s19, 4  ;;  %s1902_s15 = scalar_lea.sflag [#allocation6], %s319_s12  ;;  %s1900_s16 = int_to_ptr.vmem [resolvable:$true] %s330_s16 }
  0x93   : > { %s1523_s24 = scalar_lea.hbm %s1865_s10, 128  ;;  %s1528_s4 = scalar_lea.hbm %s2062_s1, 256 }
  0x94   : > { %p1524_p0 = scmp.ne.s32.totalorder %s1865_s10, %s1523_s24  ;;  %p1529_p6 = scmp.lt.u32.totalorder %s1865_s10, %s2062_s1 }
  0x95   : > { %p1530_p10 = scmp.lt.u32.totalorder %s1528_s4, %s1523_s24  ;;  %p1532_p7 = scmp.lt.u32.totalorder %s1523_s24, %s1865_s10 }
  0x96   : > { %p1526_p8 = pnand %p1524_p0, %p1495_p9 }
  0x97   : > { %p1531_p3 = por %p1530_p10, %p1529_p6 }
  0x98   : > { %p1527_p13 = pneg %p1526_p8 }
  0x99   : > { %p1533_p12 = por %p1532_p7, %p1531_p3 }
  0x9b   : > { %p1534_p1 = pnand %p1533_p12, %p1527_p13 }
  0x9d   : > { %1537 = shalt.err (!%p1534_p1)
}
  0x9e   : > { %s1538_s20 = scalar_lea.vmem %s1900_s16, 128  ;;  %s1639_s17 = smov [#allocation5]  }
  0x9f   : > { %p1539_p2 = scmp.ne.s32.totalorder %s1900_s16, %s1538_s20  ;;  %s1543_s18 = sshll.u32 %s1639_s17, 4  ;;  %s1544_s18 = int_to_ptr.vmem [resolvable:$false] %s1543_s18 }
  0xa0   : > { %s1545_s0 = scalar_lea.vmem %s1544_s18, 256  ;;  %p1546_p8 = scmp.lt.s32.totalorder %s1900_s16, %s1544_s18 }
  0xa1   : > { %p1541_p4 = pnand %p1539_p2, %p1495_p9  ;;  %p1547_p6 = scmp.lt.s32.totalorder %s1545_s0, %s1538_s20 }
  0xa3   : > { %p1542_p0 = pneg %p1541_p4  ;;  %p1548_p10 = por %p1547_p6, %p1546_p8 }
  0xa5   : > { %p1549_p3 = pnand %p1548_p10, %p1542_p0 }
  0xa7   : > { %1552 = shalt.err (!%p1549_p3)
}
  0xa8   : > { %1323 = dma.hbm_to_vmem [thread:$0]  (!%p1856_p11), %s1865_s10, 128, %s1900_s16, %s1902_s15, %s2099_s6, %s2099_s6, %s2098_s2  }
  0xa9   : > { %p2100_p9 = scmp.ne.s32.totalorder %s2087_s13, 0 }
  0xaa   : > { %s1934_s22 = sand.u32 (!%p2100_p9), 1, %s1623_s28   ;;  %p2101_p13 = scmp.ne.s32.totalorder (!%p2100_p9), %s2084_s11, 0 }
  0xab   : > { %342 = sbr.rel (%p2100_p9) target bundleno = 1314 (0x522), region = 52  ;;  %s1109_s14 = sshll.u32 (!%p2100_p9), %s1934_s22, 3 }
  0xac   : > { %s345_s19 = scalar_lea.sflag (!%p2100_p9), [#allocation3], %s1934_s22  ;;  %s348_s12 = scalar_lea.vmem (!%p2100_p9), [#allocation2], %s1109_s14 }
  0xb2   : > { %1598 = dma.done.wait (%p2101_p13), %s345_s19, 128  }
  0xb3   : > { %1600 = vsyncadd (%p2101_p13), %s345_s19, 4294967168  ;;  %s353_s27 = sand.u32 1, %s1709_s9   ;;  %s357_s13 = scalar_lea.vmem [#allocation5], %s1109_s14 }
  0xb4   : > { %s354_s10 = scalar_lea.sflag [#allocation6], %s353_s27 }
  0xb5   : > { %1602 = dma.done.wait (%p2101_p13), %s354_s10, 128  }
  0xb6   : > { %1604 = vsyncadd (%p2101_p13), %s354_s10, 4294967168  ;;  %p2102_p11 = scmp.eq.s32.totalorder %s1709_s9, 0 }
  0xb8   : > { %1606 = dma.done.wait (%p2102_p11), [#allocation6], 1024   ;;  %p2103_p7 = pmov %p2102_p11 }
  0xba   : > { %1608 = vsyncadd (%p2103_p7), [#allocation6], 4294966272  ;;  %p2104_p12 = pmov %p2103_p7 }
  0xbb   : > { %p2105_p1 = pmov %p2103_p7 }
  0xbc   : > { %1610 = dma.done.wait (%p2104_p12), [#allocation9], 3072  }
  0xbd   : > { %1612 = vsyncadd (%p2105_p1), [#allocation9], 4294964224  ;;  %v1640_v0 = vmov 0.0   ;;  %vm1641_vm0 = vmmov 0   ;;  %v1375_v1 = vld [vmem:[%s357_s13] sm:$0xff]   ;;  %v1376_v2 = vld [vmem:[%s348_s12] sm:$0xff]  }
  0xbe   : > { %1197 = vmatprep.subr.bf16.mxu1 %v1640_v0  ;;  %1199 = vmatprep.mubr.msk.bf16.mxu1 %vm1641_vm0, %v1640_v0  ;;  %vm439_vm1 = vcmask 130048   ;;  %v1377_v3 = vld [vmem:[#allocation7] sm:$0xff]   ;;  %v1378_v4 = vld [vmem:[#allocation7 + $0x8] sm:$0xff]   ;;  %v1379_v5 = vld [vmem:[#allocation7 + $0x10] sm:$0xff]   ;;  %s1152_s21 = sshll.u32 %s1709_s9, 4  ;;  %s405_s25 = scalar_lea.vmem [#allocation11], %s1934_s22 }
  0xbf   : > { %1223 = vmatprep.subr.bf16.mxu0 %v1640_v0  ;;  %1225 = vmatprep.mubr.msk.bf16.mxu0 %vm1641_vm0, %v1640_v0  ;;  %v1380_v6 = vld [vmem:[#allocation7 + $0x18] sm:$0xff]   ;;  %v1381_v7 = vld [vmem:[#allocation7 + $0x20] sm:$0xff]   ;;  %v1382_v8 = vld [vmem:[#allocation7 + $0x28] sm:$0xff]   ;;  %s979_s4 = sshll.u32 %s405_s25, 4  ;;  %s2017_s18 = scalar_lea.hbm %s2069_s8, %s1152_s21  ;;  %s2019_s4 = int_to_ptr.vmem [resolvable:$true] %s979_s4 }
  0xc0   : > { %1198 = vmatpush3.bf16.msra.mxu1 %v1375_v1  ;;  %v1383_v9 = vld [vmem:[#allocation7 + $0x30] sm:$0xff]   ;;  %v1384_v10 = vld [vmem:[#allocation7 + $0x38] sm:$0xff]   ;;  %v1117_v16 = vld [vmem:[%s2064_s3] ss:$0 sm:$0xff]  ;;  %s967_s9 = scalar_lea.sflag [#allocation4], %s1934_s22  ;;  %s1553_s0 = scalar_lea.vmem %s2019_s4, 16 }
  0xc1   : > { %1203 = vmatprep.subr.bf16.mxu1 %v1640_v0  ;;  %v1385_v26 = vld [vmem:[#allocation8] sm:$0xff]   ;;  %v1386_v27 = vld [vmem:[#allocation8 + $0x8] sm:$0xff]   ;;  %v1387_v28 = vld [vmem:[#allocation8 + $0x10] sm:$0xff]   ;;  %p1554_p2 = scmp.ne.s32.totalorder %s2019_s4, %s1553_s0  ;;  %s1642_s14 = smov [#allocation11]  }
  0xc2   : > { %v1388_v29 = vld [vmem:[#allocation8 + $0x18] sm:$0xff]   ;;  %v1389_v30 = vld [vmem:[#allocation8 + $0x20] sm:$0xff]   ;;  %v1390_v31 = vld [vmem:[#allocation8 + $0x28] sm:$0xff]   ;;  %s1557_s19 = sshll.u32 %s1642_s14, 4  ;;  %s1558_s19 = int_to_ptr.vmem [resolvable:$false] %s1557_s19 }
  0xc3   : > { %1200 = vmatmul.mubr.msk.bf16.vlgmr.msra.gmra.mrb[0].mxu1 %vm439_vm1, %v1376_v2  ;;  %v1391_v32 = vld [vmem:[#allocation8 + $0x30] sm:$0xff]   ;;  %v1392_v33 = vld [vmem:[#allocation8 + $0x38] sm:$0xff]   ;;  %v1394_v34 = vld [vmem:[#allocation10 + $0x40] sm:$0xff]   ;;  %p1555_p4 = pnand %p1554_p2, %p1842_p5  ;;  %s1559_s12 = scalar_lea.vmem %s1558_s19, 32 }
  0xc4   : > { %1204 = vmatpush3.bf16.msra.mxu1 %v1377_v3  ;;  %1219 = vmatprep.mubr.msk.bf16.mxu1 %vm1641_vm0, %v1640_v0  ;;  %v1396_v35 = vld [vmem:[#allocation10 + $0x48] sm:$0xff]   ;;  %v1393_v39 = vld [vmem:[#allocation10] sm:$0xff]   ;;  %v1397_v43 = vld [vmem:[#allocation10 + $0x10] sm:$0xff]   ;;  %p1560_p8 = scmp.lt.s32.totalorder %s2019_s4, %s1558_s19  ;;  %p1561_p6 = scmp.lt.s32.totalorder %s1559_s12, %s1553_s0 }
  0xc5   : > { %1205 = vmatprep.subr.bf16.mxu1 %v1640_v0  ;;  %v1395_v42 = vld [vmem:[#allocation10 + $0x8] sm:$0xff]   ;;  %v1398_v44 = vld [vmem:[#allocation10 + $0x50] sm:$0xff]   ;;  %v1399_v45 = vld [vmem:[#allocation10 + $0x18] sm:$0xff]   ;;  %p1556_p0 = pneg %p1555_p4 }
  0xc6   : > { %v1400_v46 = vld [vmem:[#allocation10 + $0x58] sm:$0xff]   ;;  %v1401_v47 = vld [vmem:[#allocation10 + $0x20] sm:$0xff]   ;;  %v1403_v49 = vld [vmem:[#allocation10 + $0x28] sm:$0xff]   ;;  %p1562_p10 = por %p1561_p6, %p1560_p8 }
  0xc7   : > { %v1402_v48 = vld [vmem:[#allocation10 + $0x60] sm:$0xff]   ;;  %v1404_v50 = vld [vmem:[#allocation10 + $0x68] sm:$0xff]   ;;  %v1405_v51 = vld [vmem:[#allocation10 + $0x30] sm:$0xff]  }
  0xc8   : > { %1206 = vmatpush3.bf16.msra.mxu1 %v1378_v4  ;;  %v1406_v52 = vld [vmem:[#allocation10 + $0x70] sm:$0xff]   ;;  %v1407_v53 = vld [vmem:[#allocation10 + $0x38] sm:$0xff]   ;;  %v1127_v55 = vld [vmem:[%s2066_s5] ss:$0 sm:$0xff]  ;;  %p1563_p3 = pnand %p1562_p10, %p1556_p0 }
  0xc9   : > { %1207 = vmatprep.subr.bf16.mxu1 %v1640_v0  ;;  %v1408_v54 = vld [vmem:[#allocation10 + $0x78] sm:$0xff]  }
  0xcc   : > { %1208 = vmatpush3.bf16.msra.mxu1 %v1379_v5 }
  0xcd   : > { %1209 = vmatprep.subr.bf16.mxu1 %v1640_v0 }
  0xd0   : > { %1210 = vmatpush3.bf16.msra.mxu1 %v1380_v6 }
  0xd1   : > { %1211 = vmatprep.subr.bf16.mxu1 %v1640_v0 }
  0xd4   : > { %1212 = vmatpush3.bf16.msra.mxu1 %v1381_v7 }
  0xd5   : > { %1213 = vmatprep.subr.bf16.mxu1 %v1640_v0 }
  0xd8   : > { %1214 = vmatpush3.bf16.msra.mxu1 %v1382_v8 }
  0xd9   : > { %1215 = vmatprep.subr.bf16.mxu1 %v1640_v0 }
  0xdc   : > { %1216 = vmatpush3.bf16.msra.mxu1 %v1383_v9 }
  0xdd   : > { %1217 = vmatprep.subr.bf16.mxu1 %v1640_v0 }
  0xe0   : > { %1218 = vmatpush3.bf16.msra.mxu1 %v1384_v10 }
  0xe1   : > { %1249 = vmatprep.subr.bf16.mxu1 %v1640_v0 }
 0x196   : > { %v477_v11 = vpop.f32.mrb[0].mxu1 }
 0x197   : > { %v1201_v12 = vpop.f32.mrb[1].mxu1 }
 0x198   : > { %v480_v13 = vpop.f32.mrb[2].mxu1 }
 0x199   : > { %v484_v14 = vpack.c.bf16 %v480_v13, %v477_v11  ;;  %v1202_v15 = vpop.f32.mrb[3].mxu1 }
 0x19b   : > { %1220 = vmatmul.mubr.bf16.vlgmr.msra.gmra.mrb[4].mxu1 %v484_v14 }
 0x19c   : > { %1265 = vmatprep.mubr.msk.bf16.mxu1 %vm1641_vm0, %v1640_v0  ;;  %1250 = vmatpush3.bf16.msra.mxu1 %v1394_v34 }
 0x19d   : > { %1251 = vmatprep.subr.bf16.mxu1 %v1640_v0 }
 0x1a0   : > { %1252 = vmatpush3.bf16.msra.mxu1 %v1396_v35 }
 0x1a1   : > { %1253 = vmatprep.subr.bf16.mxu1 %v1640_v0 }
 0x1a4   : > { %1254 = vmatpush3.bf16.msra.mxu1 %v1398_v44 }
 0x1a5   : > { %1255 = vmatprep.subr.bf16.mxu1 %v1640_v0 }
 0x1a8   : > { %1256 = vmatpush3.bf16.msra.mxu1 %v1400_v46 }
 0x1a9   : > { %1257 = vmatprep.subr.bf16.mxu1 %v1640_v0 }
 0x1ac   : > { %1258 = vmatpush3.bf16.msra.mxu1 %v1402_v48 }
 0x1ad   : > { %1259 = vmatprep.subr.bf16.mxu1 %v1640_v0 }
 0x1b0   : > { %1260 = vmatpush3.bf16.msra.mxu1 %v1404_v50 }
 0x1b1   : > { %1261 = vmatprep.subr.bf16.mxu1 %v1640_v0 }
 0x1b4   : > { %1262 = vmatpush3.bf16.msra.mxu1 %v1406_v52 }
 0x1b5   : > { %1263 = vmatprep.subr.bf16.mxu1 %v1640_v0 }
 0x1b8   : > { %1264 = vmatpush3.bf16.msra.mxu1 %v1408_v54 }
 0x26e   : > { %v573_v17 = vpop.f32.mrb[4].mxu1 }
 0x26f   : > { %v574_v18 = vadd.f32 %v1117_v16, %v573_v17  ;;  %v1221_v19 = vpop.f32.mrb[5].mxu1 }
 0x270   : > { %v576_v20 = vpop.f32.mrb[6].mxu1  ;;  %v963_v19 = vld [vmem:[%s2068_s7] sm:$0x1] }
 0x271   : > { %v577_v21 = vadd.f32 %v1117_v16, %v576_v20  ;;  %v1222_v22 = vpop.f32.mrb[7].mxu1  ;;  %v580_v23 = vmax.f32 %v574_v18, 0.0 }
 0x273   : > { %v581_v24 = vmax.f32 %v577_v21, 0.0 }
 0x275   : > { %v599_v25 = vpack.c.bf16 %v581_v24, %v580_v23 }
 0x277   : > { %1224 = vmatpush3.bf16.msra.mxu0 %v599_v25 }
 0x278   : > { %1229 = vmatprep.subr.bf16.mxu0 %v1640_v0 }
 0x27a   : > { %1226 = vmatmul.mubr.msk.bf16.vlgmr.msra.gmra.mrb[0].mxu0 %vm439_vm1, %v1376_v2 }
 0x27b   : > { %1230 = vmatpush3.bf16.msra.mxu0 %v1385_v26  ;;  %1245 = vmatprep.mubr.msk.bf16.mxu0 %vm1641_vm0, %v1640_v0 }
 0x27c   : > { %1231 = vmatprep.subr.bf16.mxu0 %v1640_v0 }
 0x27f   : > { %1232 = vmatpush3.bf16.msra.mxu0 %v1386_v27 }
 0x280   : > { %1233 = vmatprep.subr.bf16.mxu0 %v1640_v0 }
 0x283   : > { %1234 = vmatpush3.bf16.msra.mxu0 %v1387_v28 }
 0x284   : > { %1235 = vmatprep.subr.bf16.mxu0 %v1640_v0 }
 0x287   : > { %1236 = vmatpush3.bf16.msra.mxu0 %v1388_v29 }
 0x288   : > { %1237 = vmatprep.subr.bf16.mxu0 %v1640_v0 }
 0x28b   : > { %1238 = vmatpush3.bf16.msra.mxu0 %v1389_v30 }
 0x28c   : > { %1239 = vmatprep.subr.bf16.mxu0 %v1640_v0 }
 0x28f   : > { %1240 = vmatpush3.bf16.msra.mxu0 %v1390_v31 }
 0x290   : > { %1241 = vmatprep.subr.bf16.mxu0 %v1640_v0 }
 0x293   : > { %1242 = vmatpush3.bf16.msra.mxu0 %v1391_v32 }
 0x294   : > { %1243 = vmatprep.subr.bf16.mxu0 %v1640_v0 }
 0x297   : > { %1244 = vmatpush3.bf16.msra.mxu0 %v1392_v33 }
 0x298   : > { %1269 = vmatprep.subr.bf16.mxu0 %v1640_v0 }
 0x34d   : > { %v634_v36 = vpop.f32.mrb[0].mxu0 }
 0x34e   : > { %v1227_v37 = vpop.f32.mrb[1].mxu0 }
 0x34f   : > { %v637_v38 = vpop.f32.mrb[2].mxu0 }
 0x350   : > { %v641_v40 = vpack.c.bf16 %v637_v38, %v634_v36  ;;  %v1228_v41 = vpop.f32.mrb[3].mxu0 }
 0x352   : > { %1246 = vmatmul.mubr.bf16.vlgmr.msra.gmra.mrb[4].mxu0 %v641_v40 }
 0x353   : > { %1270 = vmatpush3.bf16.msra.mxu0 %v1393_v39  ;;  %1285 = vmatprep.mubr.msk.bf16.mxu0 %vm1641_vm0, %v1640_v0 }
 0x354   : > { %1271 = vmatprep.subr.bf16.mxu0 %v1640_v0 }
 0x357   : > { %1272 = vmatpush3.bf16.msra.mxu0 %v1395_v42 }
 0x358   : > { %1273 = vmatprep.subr.bf16.mxu0 %v1640_v0 }
 0x35b   : > { %1274 = vmatpush3.bf16.msra.mxu0 %v1397_v43 }
 0x35c   : > { %1275 = vmatprep.subr.bf16.mxu0 %v1640_v0 }
 0x35f   : > { %1276 = vmatpush3.bf16.msra.mxu0 %v1399_v45 }
 0x360   : > { %1277 = vmatprep.subr.bf16.mxu0 %v1640_v0 }
 0x363   : > { %1278 = vmatpush3.bf16.msra.mxu0 %v1401_v47 }
 0x364   : > { %1279 = vmatprep.subr.bf16.mxu0 %v1640_v0 }
 0x367   : > { %1280 = vmatpush3.bf16.msra.mxu0 %v1403_v49 }
 0x368   : > { %1281 = vmatprep.subr.bf16.mxu0 %v1640_v0 }
 0x36b   : > { %1282 = vmatpush3.bf16.msra.mxu0 %v1405_v51 }
 0x36c   : > { %1283 = vmatprep.subr.bf16.mxu0 %v1640_v0 }
 0x36f   : > { %1284 = vmatpush3.bf16.msra.mxu0 %v1407_v53 }
 0x425   : > { %v730_v56 = vpop.f32.mrb[4].mxu0 }
 0x426   : > { %v731_v57 = vadd.f32 %v1127_v55, %v730_v56  ;;  %v1247_v58 = vpop.f32.mrb[5].mxu0 }
 0x427   : > { %v733_v59 = vpop.f32.mrb[6].mxu0 }
 0x428   : > { %v737_v60 = vmax.f32 %v731_v57, 0.0  ;;  %v734_v61 = vadd.f32 %v1127_v55, %v733_v59  ;;  %v1248_v62 = vpop.f32.mrb[7].mxu0 }
 0x42a   : > { %v739_v63 = vrot.slane %v737_v60, 4  ;;  %v738_v1 = vmax.f32 %v734_v61, 0.0 }
 0x42c   : > { %v740_v2 = vadd.f32 %v739_v63, %v737_v60  ;;  %v745_v3 = vrot.slane %v738_v1, 4 }
 0x42e   : > { %v741_v4 = vrot.slane %v740_v2, 2  ;;  %v746_v0 = vadd.f32 %v745_v3, %v738_v1 }
 0x430   : > { %v742_v5 = vadd.f32 %v741_v4, %v740_v2  ;;  %v747_v6 = vrot.slane %v746_v0, 2 }
 0x432   : > { %v743_v7 = vrot.slane %v742_v5, 1  ;;  %v748_v8 = vadd.f32 %v747_v6, %v746_v0 }
 0x434   : > { %v744_v9 = vadd.f32 %v743_v7, %v742_v5  ;;  %v749_v10 = vrot.slane %v748_v8, 1 }
 0x436   : > { %v751_v11 = vmul.f32 0.125, %v744_v9  ;;  %v750_v12 = vadd.f32 %v749_v10, %v748_v8 }
 0x438   : > { %v752_v13 = vmul.f32 0.125, %v750_v12  ;;  %v753_v14 = vpack.c.bf16 %v751_v11, %v751_v11 }
 0x43a   : > { %1286 = vmatmul.mubr.bf16.vlgmr.msra.gmra.mrb[8].mxu0 %v753_v14  ;;  %v754_v15 = vpack.c.bf16 %v752_v13, %v752_v13 }
 0x43c   : > { %1266 = vmatmul.mubr.bf16.vlgmr.msra.gmra.mrb[8].mxu1 %v754_v15 }
 0x50d   : > { %v957_v16 = vpop.f32.mrb[8].mxu0 }
 0x50e   : > { %v1287_v17 = vpop.f32.mrb[9].mxu0 }
 0x50f   : > { %v869_v18 = vpop.f32.mrb[8].mxu1  ;;  %v960_v20 = vpop.f32.mrb[10].mxu0 }
 0x510   : > { %v958_v21 = vadd.f32 %v957_v16, %v869_v18  ;;  %v1267_v22 = vpop.f32.mrb[9].mxu1  ;;  %v1288_v23 = vpop.f32.mrb[11].mxu0 }
 0x511   : > { %v872_v24 = vpop.f32.mrb[10].mxu1 }
 0x512   : > { %v964_v25 = vadd.f32 %v963_v19, %v958_v21  ;;  %v1268_v26 = vpop.f32.mrb[11].mxu1 }
 0x514   : > { %965 = vst [vmem:[%s405_s25] sm:$0x1] %v964_v25 }
 0x515   : > { %1566 = shalt.err (!%p1563_p3)
}
 0x516   : > { %s1567_s22 = scalar_lea.hbm %s2017_s18, 16  ;;  %s1571_s13 = scalar_lea.hbm %s2069_s8, 32 }
 0x517   : > { %p1568_p9 = scmp.ne.s32.totalorder %s2017_s18, %s1567_s22  ;;  %p1572_p7 = scmp.lt.u32.totalorder %s2017_s18, %s2069_s8 }
 0x518   : > { %p1573_p12 = scmp.lt.u32.totalorder %s1571_s13, %s1567_s22  ;;  %p1575_p2 = scmp.lt.u32.totalorder %s1567_s22, %s2017_s18 }
 0x519   : > { %p1569_p13 = pnand %p1568_p9, %p1842_p5 }
 0x51a   : > { %p1574_p1 = por %p1573_p12, %p1572_p7 }
 0x51b   : > { %p1570_p11 = pneg %p1569_p13 }
 0x51c   : > { %p1576_p4 = por %p1575_p2, %p1574_p1 }
 0x51e   : > { %p1577_p0 = pnand %p1576_p4, %p1570_p11 }
 0x520   : > { %1580 = shalt.err (!%p1577_p0)
}
 0x521   : > { %1305 = dma.vmem_to_hbm [thread:$0]  (%p1842_p5), %s2019_s4, 16, %s2017_s18, %s967_s9  }
 0x522 PF: > { %s2106_s6 = sld [smem:[#allocation17_spill]]  ;;  %s2107_s16 = sld [smem:[#allocation18_spill]] }
 0x523   : > { %p2109_p6 = scmp.ge.s32.totalorder %s1631_s30, 2 }
 0x528   : > { %s991_s15 = sand.u32 1, %s2106_s6   ;;  %p2108_p8 = scmp.ne.s32.totalorder %s2107_s16, 0 }
 0x529   : > { %s992_s24 = scalar_lea.sflag [#allocation4], %s991_s15 }
 0x52a   : > { %p1325_p10 = pnand %p2109_p6, %p2108_p8 }
 0x52c   : > { %1614 = dma.done.wait (!%p1325_p10), %s992_s24, 16  }
 0x52d   : > { %1616 = vsyncadd (!%p1325_p10), %s992_s24, 4294967280  ;;  %s2110_s21 = sld [smem:[#allocation19_spill]]  ;;  %p25_p3 = scmp.ge.s32.totalorder %s1828_s26, 4  }
 0x52e   : > { %s2111_s27 = smov %s1623_s28  ;;  %s2112_s28 = smov %s1627_s29 }
 0x52f   : > { %s2114_s30 = smov %s1828_s26  ;;  %27 = sbr.rel (!%p25_p3) target bundleno = 13 (0xd), region = 122 }
 0x533   : > { %s2113_s29 = smov %s2110_s21 }
 0x536   :  { %996 = vsyncpa [#allocation3], 1 }
 0x537   :  { %998 = vsyncpa [#allocation3 + $0x1], 1 }
 0x538   :  { %999 = vsyncpa [#allocation6], 1 }
 0x539   :  { %1001 = vsyncpa [#allocation6 + $0x1], 1 }
 0x53a   :  { %1002 = vsyncpa [#allocation9], 1 }
 0x53b   :  { %1003 = vsyncpa [#allocation4], 1 }
 0x53c   :  { %1005 = vsyncpa [#allocation4 + $0x1], 1 }

</bundles_post_ra>
